<compile_context>
chip_gen: v7x
topology: tpu7x:2x2x1
jax: 0.10.0
libtpu: 0.0.40
codegen_flags: <defaults>
</compile_context>

<pallas_src>
import jax
import jax.numpy as jnp
from jax.experimental import pallas as pl
from jax.experimental.pallas import tpu as pltpu

TG = 128  # graphs per tile (one full lane width -> unmasked stores)


def sage_mlp_kernel(p_ref, adj_ref, x_ref, out_ref):
    # p_ref (SMEM, (9,)): [w_l, w_r, w1_0, w1_1, b1_0, b1_1, w2_0, w2_1, b2]
    x = x_ref[...]      # (3, TG)  node-within-graph x graph
    a = adj_ref[...]    # (3, TG)  a[j, g] = #edges (node j -> node 0) in graph g

    # SAGEConv(sum aggr, no bias, no normalize) for node 0 of each graph:
    #   h_0 = w_l * (sum_j A[0,j] * x_j) + w_r * x_0         (pure VPU FMAs)
    agg0 = (a[0:1, :] * x[0:1, :]
            + a[1:2, :] * x[1:2, :]
            + a[2:3, :] * x[2:3, :])                          # (1, TG)
    h0 = p_ref[0] * agg0 + p_ref[1] * x[0:1, :]               # (1, TG)

    # activation MLP: Linear(1,2) -> ReLU -> Linear(2,1) as broadcast VPU ops
    hid0 = jnp.maximum(h0 * p_ref[2] + p_ref[4], 0.0)
    hid1 = jnp.maximum(h0 * p_ref[3] + p_ref[5], 0.0)
    out_ref[...] = hid0 * p_ref[6] + hid1 * p_ref[7] + p_ref[8]


def non_linear_sage(x, edge_index, w_l, w_r, w1, b1, w2, b2):
    N = x.shape[0]
    assert N % 3 == 0, "NonLinearSAGE operates on 3-node graphs"
    G = N // 3

    # ---- plain-JAX glue: lower to the lane-dense layout ----------------------
    x_t = x.reshape(G, 3).T                                   # (3, G)

    src, dst = edge_index[0], edge_index[1]
    g_src, g_dst = src // 3, dst // 3
    # TODO(synk): edges crossing a 3-node-graph boundary are dropped by this
    # block-local lowering (the three_nodes_classification data never has them).
    keep = ((dst % 3) == 0) & (g_src == g_dst)
    adj0 = jnp.zeros((3, G), jnp.float32).at[src % 3, g_dst].add(
        jnp.where(keep, 1.0, 0.0))                            # (3, G)

    # pack the 9 scalar parameters for a single SMEM input
    params = jnp.concatenate([
        w_l.reshape(-1), w_r.reshape(-1),
        w1.reshape(-1), b1.reshape(-1),
        w2.reshape(-1), b2.reshape(-1)]).astype(jnp.float32)  # (9,)

    # pad the graph axis to a multiple of the lane tile
    G_pad = pl.cdiv(G, TG) * TG
    if G_pad != G:
        pad = G_pad - G
        x_t = jnp.pad(x_t, ((0, 0), (0, pad)))
        adj0 = jnp.pad(adj0, ((0, 0), (0, pad)))

    out = pl.pallas_call(
        sage_mlp_kernel,
        out_shape=jax.ShapeDtypeStruct((1, G_pad), jnp.float32),
        grid=(G_pad // TG,),
        in_specs=[
            pl.BlockSpec(memory_space=pltpu.MemorySpace.SMEM),   # packed scalars
            pl.BlockSpec((3, TG), lambda g: (0, g)),             # adj0 tile
            pl.BlockSpec((3, TG), lambda g: (0, g)),             # x tile
        ],
        out_specs=pl.BlockSpec((1, TG), lambda g: (0, g)),
        compiler_params=pltpu.CompilerParams(
            dimension_semantics=("parallel",)),
    )(params, adj0, x_t)

    return out.reshape(-1)[:G]        # out.view(-1): one value per 3-node graph


def reference(x, edge_index, w_l, w_r, w1, b1, w2, b2):
    # straight dense-JAX transcription of the PyTorch forward
    N = x.shape[0]
    adj = jnp.zeros((N, N), jnp.float32).at[edge_index[1], edge_index[0]].add(1.0)
    h = (adj @ x) * w_l + x * w_r                 # SAGEConv(1,1,sum,no bias)
    s = h.reshape(-1, 3)[:, 0:1]                  # x.view(-1,3)[:,0].view(-1,1)
    hid = jnp.maximum(s @ w1 + b1, 0.0)
    return (hid @ w2 + b2).reshape(-1)


if __name__ == "__main__":
    key = jax.random.PRNGKey(0)
    k_x, k_wl, k_wr, k_w1, k_b1, k_w2, k_b2 = jax.random.split(key, 7)

    G = 512            # batch of 3-node graphs (lane-dense: 4 tiles of 128)
    N = 3 * G

    # node features: [N, 1] float32 (matches data.x with 1-dim features)
    x = jax.random.normal(k_x, (N, 1), dtype=jnp.float32)

    # deterministic edge_index: within each graph {3g, 3g+1, 3g+2}:
    #   edges (3g+1 -> 3g), (3g+2 -> 3g), (3g -> 3g+1), (3g+1 -> 3g+2)
    base = jnp.arange(G) * 3
    src = jnp.concatenate([base + 1, base + 2, base + 0, base + 1])
    dst = jnp.concatenate([base + 0, base + 0, base + 1, base + 2])
    edge_index = jnp.stack([src, dst])                      # [2, E]

    # SAGEConv(1,1,bias=False): scalar weights for aggregated msgs / self features
    w_l = jax.random.normal(k_wl, (1, 1), dtype=jnp.float32)
    w_r = jax.random.normal(k_wr, (1, 1), dtype=jnp.float32)

    # MLP: Linear(1,2) -> ReLU -> Linear(2,1)
    w1 = jax.random.normal(k_w1, (1, 2), dtype=jnp.float32)
    b1 = jax.random.normal(k_b1, (1, 2), dtype=jnp.float32)
    w2 = jax.random.normal(k_w2, (2, 1), dtype=jnp.float32)
    b2 = jax.random.normal(k_b2, (1, 1), dtype=jnp.float32)

    out = jax.block_until_ready(
        non_linear_sage(x, edge_index, w_l, w_r, w1, b1, w2, b2))

    ref = reference(x, edge_index, w_l, w_r, w1, b1, w2, b2)
    assert out.shape == (G,)
    assert jnp.allclose(out, ref, atol=1e-5, rtol=1e-5), (out, ref)
    print("KERNEL_OK")
</pallas_src>

<mosaic_0001>
module attributes {stable_mosaic.version = 11 : i64} {
  func.func @sage_mlp_kernel(%arg0: i32, %arg1: memref<9xf32, #tpu.memory_space<smem>>, %arg2: memref<3x128xf32, #tpu.memory_space<vmem>>, %arg3: memref<3x128xf32, #tpu.memory_space<vmem>>, %arg4: memref<1x128xf32, #tpu.memory_space<vmem>>) attributes {dimension_semantics = [#tpu.dimension_semantics<parallel>], iteration_bounds = array<i64: 4>, scalar_prefetch = 0 : i64, scratch_operands = 0 : i64, tpu.core_type = #tpu.core_type<tc>, window_params = [{transform_indices = @transform_0, window_bounds = array<i64: 9>}, {transform_indices = @transform_1, window_bounds = array<i64: 3, 128>}, {transform_indices = @transform_2, window_bounds = array<i64: 3, 128>}, {transform_indices = @transform_3, window_bounds = array<i64: 1, 128>}]} {
    %c0 = arith.constant 0 : index
    %c0_0 = arith.constant 0 : index
    %0 = vector.load %arg3[%c0, %c0_0] : memref<3x128xf32, #tpu.memory_space<vmem>>, vector<3x128xf32>
    %c0_1 = arith.constant 0 : index
    %c0_2 = arith.constant 0 : index
    %1 = vector.load %arg2[%c0_1, %c0_2] : memref<3x128xf32, #tpu.memory_space<vmem>>, vector<3x128xf32>
    %2 = vector.extract_strided_slice %1 {offsets = [0, 0], sizes = [1, 128], strides = [1, 1]} : vector<3x128xf32> to vector<1x128xf32>
    %3 = vector.extract_strided_slice %0 {offsets = [0, 0], sizes = [1, 128], strides = [1, 1]} : vector<3x128xf32> to vector<1x128xf32>
    %4 = arith.mulf %2, %3 : vector<1x128xf32>
    %5 = vector.extract_strided_slice %1 {offsets = [1, 0], sizes = [1, 128], strides = [1, 1]} : vector<3x128xf32> to vector<1x128xf32>
    %6 = vector.extract_strided_slice %0 {offsets = [1, 0], sizes = [1, 128], strides = [1, 1]} : vector<3x128xf32> to vector<1x128xf32>
    %7 = arith.mulf %5, %6 : vector<1x128xf32>
    %8 = arith.addf %4, %7 : vector<1x128xf32>
    %9 = vector.extract_strided_slice %1 {offsets = [2, 0], sizes = [1, 128], strides = [1, 1]} : vector<3x128xf32> to vector<1x128xf32>
    %10 = vector.extract_strided_slice %0 {offsets = [2, 0], sizes = [1, 128], strides = [1, 1]} : vector<3x128xf32> to vector<1x128xf32>
    %11 = arith.mulf %9, %10 : vector<1x128xf32>
    %12 = arith.addf %8, %11 : vector<1x128xf32>
    %c0_3 = arith.constant 0 : index
    %13 = memref.load %arg1[%c0_3] : memref<9xf32, #tpu.memory_space<smem>>
    %14 = vector.broadcast %13 : f32 to vector<1x128xf32>
    %15 = arith.mulf %14, %12 : vector<1x128xf32>
    %c1 = arith.constant 1 : index
    %16 = memref.load %arg1[%c1] : memref<9xf32, #tpu.memory_space<smem>>
    %17 = vector.extract_strided_slice %0 {offsets = [0, 0], sizes = [1, 128], strides = [1, 1]} : vector<3x128xf32> to vector<1x128xf32>
    %18 = vector.broadcast %16 : f32 to vector<1x128xf32>
    %19 = arith.mulf %18, %17 : vector<1x128xf32>
    %20 = arith.addf %15, %19 : vector<1x128xf32>
    %c2 = arith.constant 2 : index
    %21 = memref.load %arg1[%c2] : memref<9xf32, #tpu.memory_space<smem>>
    %22 = vector.broadcast %21 : f32 to vector<1x128xf32>
    %23 = arith.mulf %20, %22 : vector<1x128xf32>
    %c4 = arith.constant 4 : index
    %24 = memref.load %arg1[%c4] : memref<9xf32, #tpu.memory_space<smem>>
    %25 = vector.broadcast %24 : f32 to vector<1x128xf32>
    %26 = arith.addf %23, %25 : vector<1x128xf32>
    %cst = arith.constant 0.000000e+00 : f32
    %27 = vector.broadcast %cst : f32 to vector<1x128xf32>
    %28 = arith.maximumf %26, %27 : vector<1x128xf32>
    %c3 = arith.constant 3 : index
    %29 = memref.load %arg1[%c3] : memref<9xf32, #tpu.memory_space<smem>>
    %30 = vector.broadcast %29 : f32 to vector<1x128xf32>
    %31 = arith.mulf %20, %30 : vector<1x128xf32>
    %c5 = arith.constant 5 : index
    %32 = memref.load %arg1[%c5] : memref<9xf32, #tpu.memory_space<smem>>
    %33 = vector.broadcast %32 : f32 to vector<1x128xf32>
    %34 = arith.addf %31, %33 : vector<1x128xf32>
    %cst_4 = arith.constant 0.000000e+00 : f32
    %35 = vector.broadcast %cst_4 : f32 to vector<1x128xf32>
    %36 = arith.maximumf %34, %35 : vector<1x128xf32>
    %c6 = arith.constant 6 : index
    %37 = memref.load %arg1[%c6] : memref<9xf32, #tpu.memory_space<smem>>
    %38 = vector.broadcast %37 : f32 to vector<1x128xf32>
    %39 = arith.mulf %28, %38 : vector<1x128xf32>
    %c7 = arith.constant 7 : index
    %40 = memref.load %arg1[%c7] : memref<9xf32, #tpu.memory_space<smem>>
    %41 = vector.broadcast %40 : f32 to vector<1x128xf32>
    %42 = arith.mulf %36, %41 : vector<1x128xf32>
    %43 = arith.addf %39, %42 : vector<1x128xf32>
    %c8 = arith.constant 8 : index
    %44 = memref.load %arg1[%c8] : memref<9xf32, #tpu.memory_space<smem>>
    %45 = vector.broadcast %44 : f32 to vector<1x128xf32>
    %46 = arith.addf %43, %45 : vector<1x128xf32>
    %c0_5 = arith.constant 0 : index
    %c0_6 = arith.constant 0 : index
    %47 = vector.load %arg4[%c0_5, %c0_6] : memref<1x128xf32, #tpu.memory_space<vmem>>, vector<1x128xf32>
    tpu.vector_store %arg4[%c0_5, %c0_6], %46 {strides = array<i32>} : memref<1x128xf32, #tpu.memory_space<vmem>>, vector<1x128xf32>,
    return
  }
  func.func @transform_0(%arg0: i32) -> i32 {
    %c0_i32 = arith.constant 0 : i32
    %c0_i32_0 = arith.constant 0 : i32
    return %c0_i32 : i32
  }
  func.func @transform_1(%arg0: i32) -> (i32, i32) {
    %c0_i32 = arith.constant 0 : i32
    %c0_i32_0 = arith.constant 0 : i32
    return %c0_i32, %arg0 : i32, i32
  }
  func.func @transform_2(%arg0: i32) -> (i32, i32) {
    %c0_i32 = arith.constant 0 : i32
    %c0_i32_0 = arith.constant 0 : i32
    return %c0_i32, %arg0 : i32, i32
  }
  func.func @transform_3(%arg0: i32) -> (i32, i32) {
    %c0_i32 = arith.constant 0 : i32
    %c0_i32_0 = arith.constant 0 : i32
    return %c0_i32, %arg0 : i32, i32
  }
}

</mosaic_0001>

<bundles_post_ra>
// kernel: tpu_custom_call.1
= control target key start
LH: loop header
LB: loop body
LE: loop exit
PB: predicated region body
PF: predicated region fallthrough
CT: control target
= control target key end

     0   :  { %8 = vsyncpa [#allocation5], 0  ;;  %s882_s0 = inlined_call_operand.hbm [shape: f32[9], index: 0, kind: input, shape index: {}]   ;;  %s883_s1 = inlined_call_operand.hbm [shape: f32[3,512], index: 1, kind: input, shape index: {}]   ;;  %s884_s2 = inlined_call_operand.hbm [shape: f32[3,512], index: 2, kind: input, shape index: {}]   ;;  %s885_s3 = inlined_call_operand.hbm [shape: f32[1,512], index: 3, kind: output, shape index: {}]  }
   0x1   :  { %9 = vsyncpa [#allocation3], 0 }
   0x2   :  { %11 = vsyncpa [#allocation3 + $0x1], 0 }
   0x3   :  { %12 = vsyncpa [#allocation8], 0 }
   0x4   :  { %14 = vsyncpa [#allocation8 + $0x1], 0 }
   0x5   :  { %15 = vsyncpa [#allocation4], 0 }
   0x6   :  { %17 = vsyncpa [#allocation4 + $0x1], 0  ;;  %s648_s12 = smov 0   ;;  %s650_s13 = smov 0  }
   0x7   :  { %s652_s14 = smov 0   ;;  %s654_s15 = smov 0  }
   0x8 LB: > { %s669_s16 = sadd.s32 4294967295, %s622_s15   ;;  %s390_s17 = sadd.s32 4294967294, %s622_s15   ;;  %s622_s15 = sphi %s654_s15, %s905_s15   ;;  %s618_s14 = sphi %s652_s14, %s904_s14   ;;  %s614_s13 = sphi %s650_s13, %s903_s13   ;;  %s610_s12 = sphi %s648_s12, %s902_s12  }
   0x9   : > { %s673_s18 = sadd.s32 1, %s622_s15   ;;  %s51_s19 = sadd.s32 1, %s618_s14 }
   0xa   : > { %s48_s20 = ssub.s32 %s622_s15, %s673_s18  ;;  %p58_p0 = scmp.ne.s32.totalorder %s618_s14, %s614_s13 }
   0xb   : > { %p49_p1 = scmp.eq.s32.totalorder %s48_s20, 0  ;;  %p64_p2 = scmp.ne.s32.totalorder %s614_s13, %s610_s12 }
   0xc   : > { %p886_p3 = scmp.eq.s32.totalorder %s669_s16, 0  ;;  %p114_p4 = scmp.eq.s32.totalorder %s669_s16, 3 }
   0xd   : > { %s685_s21 = scalar_select %p49_p1, %s618_s14, %s51_s19  }
   0xe   : > { %p689_p5 = por %p886_p3, %p64_p2  ;;  %p696_p6 = por %p114_p4, %p58_p0 }
   0xf   : > { %p120_p7 = scmp.eq.s32.totalorder %s390_s17, 3  ;;  %p391_p8 = scmp.ge.s32.totalorder %s622_s15, 1 }
  0x10   : > { %s890_s22 = scalar_select %p689_p5, 1, 0 }
  0x11   : > { %s891_s23 = scalar_select %p696_p6, 1, 0 }
  0x12   : > { %p127_p9 = scmp.lt.s32.totalorder %s622_s15, 5  ;;  %p702_p10 = por %p120_p7, %p64_p2 }
  0x13   : > { %p59_p12 = scmp.eq.s32.totalorder %s622_s15, 0  ;;  %p439_p13 = scmp.lt.s32.totalorder %s622_s15, 4 }
  0x14   : > { %s892_s24 = scalar_select %p702_p10, 1, 0 }
  0x15   : > { %p706_p11 = pnand %p391_p8, %p127_p9  ;;  %s715_s26 = sand.u32 1, %s618_s14  }
  0x16   : > { %p720_p4 = por %p59_p12, %p58_p0  ;;  %s394_s28 = sshll.u32 %s715_s26, 2 }
  0x17   : > { %s893_s25 = scalar_select %p706_p11, 1, 0 }
  0x18   : > { %p423_p1 = pneg %p706_p11  ;;  %s395_s29 = sshll.u32 %s622_s15, 6 }
  0x19   : > { %s733_s5 = scalar_lea.hbm %s883_s1, %s395_s29  ;;  %s475_s8 = scalar_lea.hbm %s882_s0, 16 }
  0x1a   : > { %p424_p2 = pnand %p423_p1, %p886_p3  ;;  %p476_p0 = scmp.ne.s32.totalorder %s882_s0, %s475_s8 }
  0x1b   : > { %p482_p12 = scmp.lt.u32.totalorder %s475_s8, %s882_s0 }
  0x1c   : > { %p477_p7 = pneg %p424_p2 }
  0x1e   : > { %p478_p8 = pnand %p477_p7, %p476_p0 }
  0x20   : > { %p479_p9 = pneg %p478_p8 }
  0x22   : > { %p484_p1 = pnand %p482_p12, %p479_p9 }
  0x24   : > { %487 = shalt.err (!%p484_p1)
}
  0x25   : > { %s624_s19 = smov [#allocation2]   ;;  %s153_s4 = scalar_lea.vmem [#allocation6], %s394_s28 }
  0x26   : > { %426 = dma.hbm_to_smem (!%p424_p2), %s882_s0, 16, %s624_s19, [#allocation5]  }
  0x27   : > { %s160_s6 = sshll.u32 %s153_s4, 4  ;;  %p753_p0 = pnand %p439_p13, %p720_p4  ;;  %s757_s6 = int_to_ptr.vmem [resolvable:$true] %s160_s6 }
  0x28   : > { %s150_s8 = scalar_lea.sflag [#allocation3], %s715_s26  ;;  %s488_s9 = scalar_lea.hbm %s733_s5, 64 }
  0x29   : > { %p489_p7 = scmp.ne.s32.totalorder %s733_s5, %s488_s9  ;;  %p490_p8 = pneg %p753_p0 }
  0x2a   : > { %s493_s11 = scalar_lea.hbm %s883_s1, 256  ;;  %p494_p13 = scmp.lt.u32.totalorder %s733_s5, %s883_s1 }
  0x2b   : > { %p491_p2 = pnand %p490_p8, %p489_p7  ;;  %p495_p4 = scmp.lt.u32.totalorder %s493_s11, %s488_s9 }
  0x2c   : > { %p497_p1 = scmp.lt.u32.totalorder %s488_s9, %s733_s5 }
  0x2d   : > { %p492_p9 = pneg %p491_p2  ;;  %p496_p12 = por %p495_p4, %p494_p13 }
  0x2f   : > { %p498_p3 = por %p497_p1, %p496_p12 }
  0x31   : > { %p499_p10 = pnand %p498_p3, %p492_p9 }
  0x33   : > { %502 = shalt.err (!%p499_p10)
}
  0x34   : > { %s503_s20 = scalar_lea.vmem %s757_s6, 64  ;;  %s625_s30 = smov [#allocation6]  }
  0x35   : > { %p504_p7 = scmp.ne.s32.totalorder %s757_s6, %s503_s20  ;;  %s508_s4 = sshll.u32 %s625_s30, 4  ;;  %s509_s4 = int_to_ptr.vmem [resolvable:$false] %s508_s4 }
  0x36   : > { %s510_s10 = scalar_lea.vmem %s509_s4, 128  ;;  %p511_p5 = scmp.lt.s32.totalorder %s757_s6, %s509_s4 }
  0x37   : > { %p506_p2 = pnand %p504_p7, %p490_p8  ;;  %p512_p13 = scmp.lt.s32.totalorder %s510_s10, %s503_s20 }
  0x39   : > { %p507_p6 = pneg %p506_p2  ;;  %p513_p4 = por %p512_p13, %p511_p5 }
  0x3b   : > { %p514_p12 = pnand %p513_p4, %p507_p6 }
  0x3d   : > { %517 = shalt.err (!%p514_p12)
}
  0x3e   : > { %430 = dma.hbm_to_vmem [thread:$0]  (!%p753_p0), %s733_s5, 64, %s757_s6, %s150_s8  }
  0x3f   : > { %s790_s11 = scalar_lea.hbm %s884_s2, %s395_s29  ;;  %s171_s17 = scalar_lea.vmem [#allocation7], %s394_s28 }
  0x40   : > { %s178_s19 = sshll.u32 %s171_s17, 4  ;;  %s168_s20 = scalar_lea.sflag [#allocation8], %s715_s26  ;;  %s179_s19 = int_to_ptr.vmem [resolvable:$true] %s178_s19 }
  0x41   : > { %s518_s30 = scalar_lea.hbm %s790_s11, 64  ;;  %s523_s29 = scalar_lea.hbm %s884_s2, 256 }
  0x42   : > { %p519_p3 = scmp.ne.s32.totalorder %s790_s11, %s518_s30  ;;  %p524_p10 = scmp.lt.u32.totalorder %s790_s11, %s884_s2 }
  0x43   : > { %p525_p9 = scmp.lt.u32.totalorder %s523_s29, %s518_s30  ;;  %p527_p7 = scmp.lt.u32.totalorder %s518_s30, %s790_s11 }
  0x44   : > { %p521_p5 = pnand %p519_p3, %p490_p8 }
  0x45   : > { %p526_p1 = por %p525_p9, %p524_p10 }
  0x46   : > { %p522_p6 = pneg %p521_p5 }
  0x47   : > { %p528_p2 = por %p527_p7, %p526_p1 }
  0x49   : > { %p529_p13 = pnand %p528_p2, %p522_p6 }
  0x4b   : > { %532 = shalt.err (!%p529_p13)
}
  0x4c   : > { %s533_s26 = scalar_lea.vmem %s179_s19, 64  ;;  %s626_s28 = smov [#allocation7]  }
  0x4d   : > { %p534_p4 = scmp.ne.s32.totalorder %s179_s19, %s533_s26  ;;  %s538_s10 = sshll.u32 %s626_s28, 4  ;;  %s539_s10 = int_to_ptr.vmem [resolvable:$false] %s538_s10 }
  0x4e   : > { %s540_s9 = scalar_lea.vmem %s539_s10, 128  ;;  %p541_p5 = scmp.lt.s32.totalorder %s179_s19, %s539_s10 }
  0x4f   : > { %p536_p12 = pnand %p534_p4, %p490_p8  ;;  %p542_p11 = scmp.lt.s32.totalorder %s540_s9, %s533_s26 }
  0x51   : > { %p537_p3 = pneg %p536_p12  ;;  %p543_p9 = por %p542_p11, %p541_p5 }
  0x53   : > { %p544_p10 = pnand %p543_p9, %p537_p3 }
  0x55   : > { %547 = shalt.err (!%p544_p10)
}
  0x56   : > { %433 = dma.hbm_to_vmem [thread:$0]  (!%p753_p0), %s790_s11, 64, %s179_s19, %s168_s20  }
  0x57   : > { %p896_p6 = scmp.ne.s32.totalorder %s893_s25, 0 }
  0x58   : > { %p897_p1 = scmp.eq.s32.totalorder (!%p896_p6), %s669_s16, 0 }
  0x59   : > { %187 = sbr.rel (%p896_p6) target bundleno = 144 (0x90), region = 32 }
  0x60   : > { %593 = dma.done.wait (%p897_p1), [#allocation5], 16   ;;  %p898_p8 = pmov %p897_p1 }
  0x61   : > { %s821_s27 = sand.u32 1, %s614_s13   ;;  %p899_p11 = scmp.ne.s32.totalorder %s890_s22, 0 }
  0x62   : > { %595 = vsyncadd (%p898_p8), [#allocation5], 4294967280  ;;  %s400_s17 = sshll.u32 %s821_s27, 2  ;;  %s194_s30 = scalar_lea.sflag [#allocation3], %s821_s27 }
  0x63   : > { %s197_s7 = scalar_lea.vmem [#allocation6], %s400_s17 }
  0x64   : > { %597 = dma.done.wait (%p899_p11), %s194_s30, 64  }
  0x65   : > { %599 = vsyncadd (%p899_p11), %s194_s30, 4294967232  ;;  %s203_s25 = scalar_lea.sflag [#allocation8], %s821_s27  ;;  %s206_s11 = scalar_lea.vmem [#allocation7], %s400_s17 }
  0x66   : > { %601 = dma.done.wait (%p899_p11), %s203_s25, 64  }
  0x67   : > { %603 = vsyncadd (%p899_p11), %s203_s25, 4294967232 }
  0x68   : > { %211 = sfence }
  0x69   : > { %v234_v0 = vld [vmem:[%s206_s11] sm:$0x7]  ;;  %v235_v1 = vld [vmem:[%s197_s7] sm:$0x7]  ;;  %s244_s19 = sld [smem:[#allocation2]]  ;;  %s402_s20 = sld [smem:[#allocation2 + $0x1]] }
  0x6a   : > { %v236_v2 = vmul.f32 %v235_v1, %v234_v0  ;;  %s403_s5 = sld [smem:[#allocation2 + $0x2]]  ;;  %s405_s6 = sld [smem:[#allocation2 + $0x3]] }
  0x6b   : > { %s404_s29 = sld [smem:[#allocation2 + $0x4]]  ;;  %s406_s8 = sld [smem:[#allocation2 + $0x5]] }
  0x6c   : > { %v238_v3 = vrot.slane %v236_v2, 1  ;;  %v241_v4 = vrot.slane %v236_v2, 2  ;;  %s407_s4 = sld [smem:[#allocation2 + $0x6]]  ;;  %s408_s22 = sld [smem:[#allocation2 + $0x7]] }
  0x6d   : > { %s409_s26 = sld [smem:[#allocation2 + $0x8]]  ;;  %s233_s28 = scalar_lea.vmem [#allocation9], %s821_s27 }
  0x6e   : > { %v240_v5 = vadd.f32 %v238_v3, %v236_v2  ;;  %s289_s10 = sshll.u32 %s233_s28, 4  ;;  %s410_s9 = sshll.u32 %s669_s16, 4  ;;  %s836_s10 = int_to_ptr.vmem [resolvable:$true] %s289_s10 }
  0x6f   : > { %v245_v7 = vstv %s244_s19  ;;  %v248_v8 = vstv %s402_s20  ;;  %s841_s7 = scalar_lea.hbm %s885_s3, %s410_s9  ;;  %s277_s25 = scalar_lea.sflag [#allocation4], %s821_s27 }
  0x70   : > { %v243_v6 = vadd.f32 %v241_v4, %v240_v5  ;;  %v249_v9 = vmul.f32 %v248_v8, %v234_v0  ;;  %v252_v11 = vstv %s403_s5  ;;  %v259_v12 = vstv %s405_s6  ;;  %s548_s11 = scalar_lea.vmem %s836_s10, 16  ;;  %p900_p7 = scmp.ne.s32.totalorder %s891_s23, 0 }
  0x71   : > { %v255_v14 = vstv %s404_s29  ;;  %v262_v15 = vstv %s406_s8  ;;  %p549_p0 = scmp.ne.s32.totalorder %s836_s10, %s548_s11  ;;  %s627_s16 = smov [#allocation9]  }
  0x72   : > { %v246_v10 = vmul.f32 %v245_v7, %v243_v6  ;;  %v266_v20 = vstv %s407_s4  ;;  %v269_v21 = vstv %s408_s22  ;;  %s552_s19 = sshll.u32 %s627_s16, 4  ;;  %s553_s19 = int_to_ptr.vmem [resolvable:$false] %s552_s19 }
  0x73   : > { %v273_v26 = vstv %s409_s26  ;;  %p550_p2 = pnand %p549_p0, %p900_p7  ;;  %s554_s20 = scalar_lea.vmem %s553_s19, 32 }
  0x74   : > { %v250_v13 = vadd.f32 %v249_v9, %v246_v10  ;;  %p555_p4 = scmp.lt.s32.totalorder %s836_s10, %s553_s19  ;;  %p556_p12 = scmp.lt.s32.totalorder %s554_s20, %s548_s11 }
  0x75   : > { %p551_p13 = pneg %p550_p2 }
  0x76   : > { %v253_v16 = vmul.f32 %v252_v11, %v250_v13  ;;  %v260_v17 = vmul.f32 %v259_v12, %v250_v13  ;;  %p557_p3 = por %p556_p12, %p555_p4 }
  0x78   : > { %v256_v18 = vadd.f32 %v255_v14, %v253_v16  ;;  %v263_v19 = vadd.f32 %v262_v15, %v260_v17  ;;  %p558_p5 = pnand %p557_p3, %p551_p13 }
  0x7a   : > { %v257_v22 = vmax.f32 %v256_v18, 0.0  ;;  %v264_v23 = vmax.f32 %v263_v19, 0.0 }
  0x7c   : > { %v267_v24 = vmul.f32 %v266_v20, %v257_v22  ;;  %v270_v25 = vmul.f32 %v269_v21, %v264_v23 }
  0x7e   : > { %v271_v27 = vadd.f32 %v270_v25, %v267_v24 }
  0x80   : > { %v274_v28 = vadd.f32 %v273_v26, %v271_v27 }
  0x82   : > { %275 = vst [vmem:[%s233_s28] sm:$0x1] %v274_v28 }
  0x83   : > { %561 = shalt.err (!%p558_p5)
}
  0x84   : > { %s562_s27 = scalar_lea.hbm %s841_s7, 16  ;;  %s566_s29 = scalar_lea.hbm %s885_s3, 64 }
  0x85   : > { %p563_p9 = scmp.ne.s32.totalorder %s841_s7, %s562_s27  ;;  %p567_p1 = scmp.lt.u32.totalorder %s841_s7, %s885_s3 }
  0x86   : > { %p568_p8 = scmp.lt.u32.totalorder %s566_s29, %s562_s27  ;;  %p570_p0 = scmp.lt.u32.totalorder %s562_s27, %s841_s7 }
  0x87   : > { %p564_p10 = pnand %p563_p9, %p900_p7 }
  0x88   : > { %p569_p11 = por %p568_p8, %p567_p1 }
  0x89   : > { %p565_p6 = pneg %p564_p10 }
  0x8a   : > { %p571_p2 = por %p570_p0, %p569_p11 }
  0x8c   : > { %p572_p13 = pnand %p571_p2, %p565_p6 }
  0x8e   : > { %575 = shalt.err (!%p572_p13)
}
  0x8f   : > { %421 = dma.vmem_to_hbm [thread:$0]  (%p900_p7), %s836_s10, 16, %s841_s7, %s277_s25  }
  0x90 PF: > { %p441_p4 = scmp.ge.s32.totalorder %s622_s15, 2  ;;  %s301_s22 = sand.u32 1, %s610_s12  }
  0x91   : > { %p901_p12 = scmp.ne.s32.totalorder %s892_s24, 0  ;;  %s302_s26 = scalar_lea.sflag [#allocation4], %s301_s22 }
  0x93   : > { %p435_p3 = pnand %p441_p4, %p901_p12 }
  0x95   : > { %605 = dma.done.wait (!%p435_p3), %s302_s26, 16  }
  0x96   : > { %607 = vsyncadd (!%p435_p3), %s302_s26, 4294967280  ;;  %p20_p5 = scmp.ge.s32.totalorder %s673_s18, 6   ;;  %s902_s12 = smov %s614_s13 }
  0x97   : > { %s903_s13 = smov %s618_s14  ;;  %s904_s14 = smov %s685_s21 }
  0x98   : > { %s905_s15 = smov %s673_s18  ;;  %22 = sbr.rel (!%p20_p5) target bundleno = 8 (0x8), region = 95 }
  0x9f   :  { %306 = vsyncpa [#allocation3], 1 }
  0xa0   :  { %308 = vsyncpa [#allocation3 + $0x1], 1 }
  0xa1   :  { %309 = vsyncpa [#allocation8], 1 }
  0xa2   :  { %311 = vsyncpa [#allocation8 + $0x1], 1 }
  0xa3   :  { %312 = vsyncpa [#allocation4], 1 }
  0xa4   :  { %314 = vsyncpa [#allocation4 + $0x1], 1 }
  0xa5   :  { %315 = vsyncpa [#allocation5], 1 }
  0xa6   :  { %317 = vsyncpa [#allocation5 + $0x1], 1 }

</bundles_post_ra>
